<compile_context>
chip_gen: v7x
topology: tpu7x:2x2x1
jax: 0.10.0
libtpu: 0.0.40
codegen_flags: <defaults>
</compile_context>

<pallas_src>
import functools

import jax
import jax.numpy as jnp
from jax.experimental import pallas as pl
from jax.experimental.pallas import tpu as pltpu

HIDDEN = 256
OUT_LANES = 128      # lane-dense output slab: q1 in lane 0, q2 in lane 1
BLOCK_B = 512        # batch tile cap; safe under v5e 16 MiB scoped-VMEM default
SMALL_B = 256        # at/below this, run a single block (tiny RL batches)


def _round_up(x, m):
    return ((x + m - 1) // m) * m


# ----------------------------------------------------------------------------
# Kernel: both Q-heads at once, bf16 MXU dots with f32 accumulation.
# ----------------------------------------------------------------------------
def critic_kernel(s_ref, a_ref, w1s_ref, w1a_ref, bh_ref, ba_ref,
                  w2_ref, w3_ref, q_ref):
    f32 = jnp.float32

    # Layer 1, both heads: relu(s @ [W1.T | W4.T] + [b1 | b4])
    h = jnp.maximum(
        jnp.dot(s_ref[...], w1s_ref[...], preferred_element_type=f32)
        + bh_ref[...],
        0.0,
    )                                                                # (bb, 2H) f32

    # Action projection, both heads: a @ [W2a.T | W5a.T] + [b2a | b5a]
    ap = (
        jnp.dot(a_ref[...], w1a_ref[...], preferred_element_type=f32)
        + ba_ref[...]
    )                                                                # (bb, 2H) f32

    hb = h.astype(jnp.bfloat16)

    # Layer 2: two dense 256x256 dots (one per head) — no zero-padded block-diag.
    z1 = jnp.maximum(
        jnp.dot(hb[:, :HIDDEN], w2_ref[0], preferred_element_type=f32)
        + ap[:, :HIDDEN],
        0.0,
    )
    z2 = jnp.maximum(
        jnp.dot(hb[:, HIDDEN:], w2_ref[1], preferred_element_type=f32)
        + ap[:, HIDDEN:],
        0.0,
    )

    # Layer 3: lane-dense (bb, 128) store; q1 pre-bias in lane 0, q2 in lane 1.
    q_ref[...] = (
        jnp.dot(z1.astype(jnp.bfloat16), w3_ref[0], preferred_element_type=f32)
        + jnp.dot(z2.astype(jnp.bfloat16), w3_ref[1], preferred_element_type=f32)
    )


# ----------------------------------------------------------------------------
# Parameters (PyTorch nn.Linear layout: weight (out,in), bias (out,)).
# ----------------------------------------------------------------------------
def init_params(key, state_dim, action_dim):
    def linear(k, out_f, in_f):
        kw, kb = jax.random.split(k)
        bound = 1.0 / jnp.sqrt(in_f)
        w = jax.random.uniform(kw, (out_f, in_f), jnp.float32, -bound, bound)
        b = jax.random.uniform(kb, (out_f,), jnp.float32, -bound, bound)
        return w, b

    keys = jax.random.split(key, 8)
    return {
        "fcn_1": linear(keys[0], HIDDEN, state_dim),
        "fcn_2_s": linear(keys[1], HIDDEN, HIDDEN),
        "fcn_2_a": linear(keys[2], HIDDEN, action_dim),
        "fcn_3": linear(keys[3], 1, HIDDEN),
        "fcn_4": linear(keys[4], HIDDEN, state_dim),
        "fcn_5_s": linear(keys[5], HIDDEN, HIDDEN),
        "fcn_5_a": linear(keys[6], HIDDEN, action_dim),
        "fcn_6": linear(keys[7], 1, HIDDEN),
    }


def pack_params(params):
    """One-time packing of the 8 Linear layers into kernel operands (bf16 weights)."""
    bf16, f32 = jnp.bfloat16, jnp.float32
    H = HIDDEN

    w1, b1 = params["fcn_1"]
    w2s, _ = params["fcn_2_s"]          # bias unused (matches PyTorch forward)
    w2a, b2a = params["fcn_2_a"]
    w3, b3 = params["fcn_3"]
    w4, b4 = params["fcn_4"]
    w5s, _ = params["fcn_5_s"]          # bias unused (matches PyTorch forward)
    w5a, b5a = params["fcn_5_a"]
    w6, b6 = params["fcn_6"]

    # Layer 1: state path (S, 2H) and action path (A, 2H), biases kept f32.
    w1s = jnp.concatenate([w1.T, w4.T], axis=1).astype(bf16)        # (S, 2H)
    w1a = jnp.concatenate([w2a.T, w5a.T], axis=1).astype(bf16)      # (A, 2H)
    bh = jnp.concatenate([b1, b4])[None, :].astype(f32)             # (1, 2H)
    ba = jnp.concatenate([b2a, b5a])[None, :].astype(f32)           # (1, 2H)

    # Layer 2: two dense (H, H) blocks stacked -> (2, H, H).
    w2p = jnp.stack([w2s.T, w5s.T]).astype(bf16)                    # (2, H, H)

    # Layer 3: lane-dense padded (2, H, 128); head 0 -> lane 0, head 1 -> lane 1.
    w3p = jnp.zeros((2, H, OUT_LANES), f32)
    w3p = w3p.at[0, :, 0].set(w3[0]).at[1, :, 1].set(w6[0]).astype(bf16)

    b_out = jnp.stack([b3[0], b6[0]]).astype(f32)                   # (2,)

    return {"w1s": w1s, "w1a": w1a, "bh": bh, "ba": ba,
            "w2p": w2p, "w3p": w3p, "b_out": b_out}


# ----------------------------------------------------------------------------
# Forward wrapper (jitted; weight packing already done).
# ----------------------------------------------------------------------------
@jax.jit
def critic_forward(s, a, packed):
    w1s, w1a = packed["w1s"], packed["w1a"]
    bh, ba = packed["bh"], packed["ba"]
    w2p, w3p, b_out = packed["w2p"], packed["w3p"], packed["b_out"]

    B = s.shape[0]
    S, A = s.shape[1], a.shape[1]

    sb = s.astype(jnp.bfloat16)
    ab = a.astype(jnp.bfloat16)

    if B <= SMALL_B:
        bb, Bp = B, B
    else:
        # >= 2 grid steps whenever we split, so both v7x TensorCores get work.
        bb = min(BLOCK_B, _round_up((B + 1) // 2, 8))
        Bp = _round_up(B, bb)
        if Bp != B:
            sb = jnp.pad(sb, ((0, Bp - B), (0, 0)))
            ab = jnp.pad(ab, ((0, Bp - B), (0, 0)))

    q = pl.pallas_call(
        critic_kernel,
        out_shape=jax.ShapeDtypeStruct((Bp, OUT_LANES), jnp.float32),
        grid_spec=pltpu.PrefetchScalarGridSpec(
            num_scalar_prefetch=0,
            grid=(Bp // bb,),
            in_specs=[
                pl.BlockSpec((bb, S), lambda i: (i, 0)),        # s tile (bf16)
                pl.BlockSpec((bb, A), lambda i: (i, 0)),        # a tile (bf16)
                pl.BlockSpec(w1s.shape, lambda i: (0, 0)),      # resident weights
                pl.BlockSpec(w1a.shape, lambda i: (0, 0)),
                pl.BlockSpec(bh.shape, lambda i: (0, 0)),
                pl.BlockSpec(ba.shape, lambda i: (0, 0)),
                pl.BlockSpec(w2p.shape, lambda i: (0, 0, 0)),
                pl.BlockSpec(w3p.shape, lambda i: (0, 0, 0)),
            ],
            out_specs=pl.BlockSpec((bb, OUT_LANES), lambda i: (i, 0)),
        ),
        compiler_params=pltpu.CompilerParams(
            dimension_semantics=("parallel",),
        ),
    )(sb, ab, w1s, w1a, bh, ba, w2p, w3p)

    q1 = q[:B, 0:1] + b_out[0]
    q2 = q[:B, 1:2] + b_out[1]
    return q1, q2


# ----------------------------------------------------------------------------
# Plain-JAX reference mirroring the PyTorch forward (unfused f32 params).
# ----------------------------------------------------------------------------
def critic_forward_ref(s, a, params):
    w1, b1 = params["fcn_1"]
    w2s, _ = params["fcn_2_s"]
    w2a, b2a = params["fcn_2_a"]
    w3, b3 = params["fcn_3"]
    w4, b4 = params["fcn_4"]
    w5s, _ = params["fcn_5_s"]
    w5a, b5a = params["fcn_5_a"]
    w6, b6 = params["fcn_6"]

    s1 = jax.nn.relu(s @ w1.T + b1)
    s1 = jax.nn.relu(s1 @ w2s.T + a @ w2a.T + b2a)
    q1 = s1 @ w3.T + b3

    s2 = jax.nn.relu(s @ w4.T + b4)
    s2 = jax.nn.relu(s2 @ w5s.T + a @ w5a.T + b5a)
    q2 = s2 @ w6.T + b6
    return q1, q2


if __name__ == "__main__":
    key = jax.random.PRNGKey(0)
    k_param, k_s, k_a, k_s2, k_a2 = jax.random.split(key, 5)

    batch, state_dim, action_dim = 8, 16, 4
    params = init_params(k_param, state_dim, action_dim)
    packed = pack_params(params)

    # bf16 operands (f32 accumulation) => loosened tolerance vs the f32 reference.
    ATOL = RTOL = 5e-2

    # Small-batch (single block) check.
    s = jax.random.normal(k_s, (batch, state_dim), jnp.float32)
    a = jax.random.normal(k_a, (batch, action_dim), jnp.float32)
    q1, q2 = critic_forward(s, a, packed)
    jax.block_until_ready((q1, q2))
    q1_ref, q2_ref = critic_forward_ref(s, a, params)
    assert q1.shape == (batch, 1) and q2.shape == (batch, 1)
    assert jnp.allclose(q1, q1_ref, atol=ATOL, rtol=RTOL)
    assert jnp.allclose(q2, q2_ref, atol=ATOL, rtol=RTOL)

    # Larger batch exercising the multi-block (>=2 grid steps) + padding path.
    big_b = 300
    sb = jax.random.normal(k_s2, (big_b, state_dim), jnp.float32)
    ab = jax.random.normal(k_a2, (big_b, action_dim), jnp.float32)
    q1b, q2b = critic_forward(sb, ab, packed)
    jax.block_until_ready((q1b, q2b))
    q1b_ref, q2b_ref = critic_forward_ref(sb, ab, params)
    assert q1b.shape == (big_b, 1) and q2b.shape == (big_b, 1)
    assert jnp.allclose(q1b, q1b_ref, atol=ATOL, rtol=RTOL)
    assert jnp.allclose(q2b, q2b_ref, atol=ATOL, rtol=RTOL)

    print("KERNEL_OK")
</pallas_src>

<mosaic_0001>
module attributes {stable_mosaic.version = 11 : i64} {
  func.func @critic_kernel(%arg0: i32, %arg1: memref<8x16xbf16, #tpu.memory_space<vmem>>, %arg2: memref<8x4xbf16, #tpu.memory_space<vmem>>, %arg3: memref<16x512xbf16, #tpu.memory_space<vmem>>, %arg4: memref<4x512xbf16, #tpu.memory_space<vmem>>, %arg5: memref<1x512xf32, #tpu.memory_space<vmem>>, %arg6: memref<1x512xf32, #tpu.memory_space<vmem>>, %arg7: memref<2x256x256xbf16, #tpu.memory_space<vmem>>, %arg8: memref<2x256x128xbf16, #tpu.memory_space<vmem>>, %arg9: memref<8x128xf32, #tpu.memory_space<vmem>>) attributes {dimension_semantics = [#tpu.dimension_semantics<parallel>], iteration_bounds = array<i64: 1>, scalar_prefetch = 0 : i64, scratch_operands = 0 : i64, tpu.core_type = #tpu.core_type<tc>, window_params = [{transform_indices = @transform_0, window_bounds = array<i64: 8, 16>}, {transform_indices = @transform_1, window_bounds = array<i64: 8, 4>}, {pipeline_mode = #tpu.pipeline_mode<synchronous>, transform_indices = @transform_2, window_bounds = array<i64: 16, 512>}, {pipeline_mode = #tpu.pipeline_mode<synchronous>, transform_indices = @transform_3, window_bounds = array<i64: 4, 512>}, {pipeline_mode = #tpu.pipeline_mode<synchronous>, transform_indices = @transform_4, window_bounds = array<i64: 1, 512>}, {pipeline_mode = #tpu.pipeline_mode<synchronous>, transform_indices = @transform_5, window_bounds = array<i64: 1, 512>}, {pipeline_mode = #tpu.pipeline_mode<synchronous>, transform_indices = @transform_6, window_bounds = array<i64: 2, 256, 256>}, {pipeline_mode = #tpu.pipeline_mode<synchronous>, transform_indices = @transform_7, window_bounds = array<i64: 2, 256, 128>}, {transform_indices = @transform_8, window_bounds = array<i64: 8, 128>}]} {
    %c0 = arith.constant 0 : index
    %c0_0 = arith.constant 0 : index
    %0 = vector.load %arg1[%c0, %c0_0] : memref<8x16xbf16, #tpu.memory_space<vmem>>, vector<8x16xbf16>
    %c0_1 = arith.constant 0 : index
    %c0_2 = arith.constant 0 : index
    %1 = vector.load %arg3[%c0_1, %c0_2] : memref<16x512xbf16, #tpu.memory_space<vmem>>, vector<16x512xbf16>
    %cst = arith.constant dense<0.000000e+00> : vector<8x512xf32>
    %2 = tpu.matmul %0, %1, %cst {dimension_numbers = #tpu.dot_dimension_numbers<[1], [0], [0], [1], [0, 0, 1, 1], [], []>} : vector<8x16xbf16>, vector<16x512xbf16>, vector<8x512xf32> -> vector<8x512xf32>
    %c0_3 = arith.constant 0 : index
    %c0_4 = arith.constant 0 : index
    %3 = vector.load %arg5[%c0_3, %c0_4] : memref<1x512xf32, #tpu.memory_space<vmem>>, vector<1x512xf32>
    %4 = vector.broadcast %3 : vector<1x512xf32> to vector<8x512xf32>
    %5 = arith.addf %2, %4 : vector<8x512xf32>
    %cst_5 = arith.constant 0.000000e+00 : f32
    %6 = vector.broadcast %cst_5 : f32 to vector<8x512xf32>
    %7 = arith.maximumf %5, %6 : vector<8x512xf32>
    %c0_6 = arith.constant 0 : index
    %c0_7 = arith.constant 0 : index
    %8 = vector.load %arg2[%c0_6, %c0_7] : memref<8x4xbf16, #tpu.memory_space<vmem>>, vector<8x4xbf16>
    %c0_8 = arith.constant 0 : index
    %c0_9 = arith.constant 0 : index
    %9 = vector.load %arg4[%c0_8, %c0_9] : memref<4x512xbf16, #tpu.memory_space<vmem>>, vector<4x512xbf16>
    %cst_10 = arith.constant dense<0.000000e+00> : vector<8x512xf32>
    %10 = tpu.matmul %8, %9, %cst_10 {dimension_numbers = #tpu.dot_dimension_numbers<[1], [0], [0], [1], [0, 0, 1, 1], [], []>} : vector<8x4xbf16>, vector<4x512xbf16>, vector<8x512xf32> -> vector<8x512xf32>
    %c0_11 = arith.constant 0 : index
    %c0_12 = arith.constant 0 : index
    %11 = vector.load %arg6[%c0_11, %c0_12] : memref<1x512xf32, #tpu.memory_space<vmem>>, vector<1x512xf32>
    %12 = vector.broadcast %11 : vector<1x512xf32> to vector<8x512xf32>
    %13 = arith.addf %10, %12 : vector<8x512xf32>
    %14 = arith.truncf %7 : vector<8x512xf32> to vector<8x512xbf16>
    %15 = vector.extract_strided_slice %14 {offsets = [0, 0], sizes = [8, 256], strides = [1, 1]} : vector<8x512xbf16> to vector<8x256xbf16>
    %c0_13 = arith.constant 0 : index
    %c0_14 = arith.constant 0 : index
    %c0_15 = arith.constant 0 : index
    %16 = vector.load %arg7[%c0_13, %c0_14, %c0_15] : memref<2x256x256xbf16, #tpu.memory_space<vmem>>, vector<1x256x256xbf16>
    %17 = vector.shape_cast %16 : vector<1x256x256xbf16> to vector<256x256xbf16>
    %cst_16 = arith.constant dense<0.000000e+00> : vector<8x256xf32>
    %18 = tpu.matmul %15, %17, %cst_16 {dimension_numbers = #tpu.dot_dimension_numbers<[1], [0], [0], [1], [0, 0, 1, 1], [], []>} : vector<8x256xbf16>, vector<256x256xbf16>, vector<8x256xf32> -> vector<8x256xf32>
    %19 = vector.extract_strided_slice %13 {offsets = [0, 0], sizes = [8, 256], strides = [1, 1]} : vector<8x512xf32> to vector<8x256xf32>
    %20 = arith.addf %18, %19 : vector<8x256xf32>
    %cst_17 = arith.constant 0.000000e+00 : f32
    %21 = vector.broadcast %cst_17 : f32 to vector<8x256xf32>
    %22 = arith.maximumf %20, %21 : vector<8x256xf32>
    %23 = vector.extract_strided_slice %14 {offsets = [0, 256], sizes = [8, 256], strides = [1, 1]} : vector<8x512xbf16> to vector<8x256xbf16>
    %c1 = arith.constant 1 : index
    %c0_18 = arith.constant 0 : index
    %c0_19 = arith.constant 0 : index
    %24 = vector.load %arg7[%c1, %c0_18, %c0_19] : memref<2x256x256xbf16, #tpu.memory_space<vmem>>, vector<1x256x256xbf16>
    %25 = vector.shape_cast %24 : vector<1x256x256xbf16> to vector<256x256xbf16>
    %cst_20 = arith.constant dense<0.000000e+00> : vector<8x256xf32>
    %26 = tpu.matmul %23, %25, %cst_20 {dimension_numbers = #tpu.dot_dimension_numbers<[1], [0], [0], [1], [0, 0, 1, 1], [], []>} : vector<8x256xbf16>, vector<256x256xbf16>, vector<8x256xf32> -> vector<8x256xf32>
    %27 = vector.extract_strided_slice %13 {offsets = [0, 256], sizes = [8, 256], strides = [1, 1]} : vector<8x512xf32> to vector<8x256xf32>
    %28 = arith.addf %26, %27 : vector<8x256xf32>
    %cst_21 = arith.constant 0.000000e+00 : f32
    %29 = vector.broadcast %cst_21 : f32 to vector<8x256xf32>
    %30 = arith.maximumf %28, %29 : vector<8x256xf32>
    %31 = arith.truncf %22 : vector<8x256xf32> to vector<8x256xbf16>
    %c0_22 = arith.constant 0 : index
    %c0_23 = arith.constant 0 : index
    %c0_24 = arith.constant 0 : index
    %32 = vector.load %arg8[%c0_22, %c0_23, %c0_24] : memref<2x256x128xbf16, #tpu.memory_space<vmem>>, vector<1x256x128xbf16>
    %33 = vector.shape_cast %32 : vector<1x256x128xbf16> to vector<256x128xbf16>
    %cst_25 = arith.constant dense<0.000000e+00> : vector<8x128xf32>
    %34 = tpu.matmul %31, %33, %cst_25 {dimension_numbers = #tpu.dot_dimension_numbers<[1], [0], [0], [1], [0, 0, 1, 1], [], []>} : vector<8x256xbf16>, vector<256x128xbf16>, vector<8x128xf32> -> vector<8x128xf32>
    %35 = arith.truncf %30 : vector<8x256xf32> to vector<8x256xbf16>
    %c1_26 = arith.constant 1 : index
    %c0_27 = arith.constant 0 : index
    %c0_28 = arith.constant 0 : index
    %36 = vector.load %arg8[%c1_26, %c0_27, %c0_28] : memref<2x256x128xbf16, #tpu.memory_space<vmem>>, vector<1x256x128xbf16>
    %37 = vector.shape_cast %36 : vector<1x256x128xbf16> to vector<256x128xbf16>
    %cst_29 = arith.constant dense<0.000000e+00> : vector<8x128xf32>
    %38 = tpu.matmul %35, %37, %cst_29 {dimension_numbers = #tpu.dot_dimension_numbers<[1], [0], [0], [1], [0, 0, 1, 1], [], []>} : vector<8x256xbf16>, vector<256x128xbf16>, vector<8x128xf32> -> vector<8x128xf32>
    %39 = arith.addf %34, %38 : vector<8x128xf32>
    %c0_30 = arith.constant 0 : index
    %c0_31 = arith.constant 0 : index
    %40 = vector.load %arg9[%c0_30, %c0_31] : memref<8x128xf32, #tpu.memory_space<vmem>>, vector<8x128xf32>
    tpu.vector_store %arg9[%c0_30, %c0_31], %39 {strides = array<i32>} : memref<8x128xf32, #tpu.memory_space<vmem>>, vector<8x128xf32>,
    return
  }
  func.func @transform_0(%arg0: i32) -> (i32, i32) {
    %c0_i32 = arith.constant 0 : i32
    %c0_i32_0 = arith.constant 0 : i32
    return %arg0, %c0_i32 : i32, i32
  }
  func.func @transform_1(%arg0: i32) -> (i32, i32) {
    %c0_i32 = arith.constant 0 : i32
    %c0_i32_0 = arith.constant 0 : i32
    return %arg0, %c0_i32 : i32, i32
  }
  func.func @transform_2(%arg0: i32) -> (i32, i32) {
    %c0_i32 = arith.constant 0 : i32
    %c0_i32_0 = arith.constant 0 : i32
    %c0_i32_1 = arith.constant 0 : i32
    return %c0_i32, %c0_i32_0 : i32, i32
  }
  func.func @transform_3(%arg0: i32) -> (i32, i32) {
    %c0_i32 = arith.constant 0 : i32
    %c0_i32_0 = arith.constant 0 : i32
    %c0_i32_1 = arith.constant 0 : i32
    return %c0_i32, %c0_i32_0 : i32, i32
  }
  func.func @transform_4(%arg0: i32) -> (i32, i32) {
    %c0_i32 = arith.constant 0 : i32
    %c0_i32_0 = arith.constant 0 : i32
    %c0_i32_1 = arith.constant 0 : i32
    return %c0_i32, %c0_i32_0 : i32, i32
  }
  func.func @transform_5(%arg0: i32) -> (i32, i32) {
    %c0_i32 = arith.constant 0 : i32
    %c0_i32_0 = arith.constant 0 : i32
    %c0_i32_1 = arith.constant 0 : i32
    return %c0_i32, %c0_i32_0 : i32, i32
  }
  func.func @transform_6(%arg0: i32) -> (i32, i32, i32) {
    %c0_i32 = arith.constant 0 : i32
    %c0_i32_0 = arith.constant 0 : i32
    %c0_i32_1 = arith.constant 0 : i32
    %c0_i32_2 = arith.constant 0 : i32
    return %c0_i32, %c0_i32_0, %c0_i32_1 : i32, i32, i32
  }
  func.func @transform_7(%arg0: i32) -> (i32, i32, i32) {
    %c0_i32 = arith.constant 0 : i32
    %c0_i32_0 = arith.constant 0 : i32
    %c0_i32_1 = arith.constant 0 : i32
    %c0_i32_2 = arith.constant 0 : i32
    return %c0_i32, %c0_i32_0, %c0_i32_1 : i32, i32, i32
  }
  func.func @transform_8(%arg0: i32) -> (i32, i32) {
    %c0_i32 = arith.constant 0 : i32
    %c0_i32_0 = arith.constant 0 : i32
    return %arg0, %c0_i32 : i32, i32
  }
}

</mosaic_0001>

<bundles_post_ra>
// kernel: critic_forward.1
= control target key start
LH: loop header
LB: loop body
LE: loop exit
PB: predicated region body
PF: predicated region fallthrough
CT: control target
= control target key end

     0   :  { %13 = vsyncpa [#allocation3], 0  ;;  %s1646_s0 = inlined_call_operand.vmem [shape: bf16[8,16], index: 0, kind: input, shape index: {}]   ;;  %s1647_s1 = inlined_call_operand.vmem [shape: bf16[8,4], index: 1, kind: input, shape index: {}]   ;;  %s1648_s2 = inlined_call_operand.vmem [shape: bf16[16,512], index: 2, kind: input, shape index: {}]   ;;  %s1649_s3 = inlined_call_operand.vmem [shape: bf16[4,512], index: 3, kind: input, shape index: {}]   ;;  %s1650_s4 = inlined_call_operand.vmem [shape: f32[1,512], index: 4, kind: input, shape index: {}]   ;;  %s1651_s5 = inlined_call_operand.vmem [shape: f32[1,512], index: 5, kind: input, shape index: {}]   ;;  %s1652_s6 = inlined_call_operand.hbm [shape: bf16[2,256,256], index: 6, kind: input, shape index: {}]   ;;  %s1653_s7 = inlined_call_operand.hbm [shape: bf16[2,256,128], index: 7, kind: input, shape index: {}]   ;;  %s1654_s8 = inlined_call_operand.vmem [shape: f32[8,128], index: 8, kind: output, shape index: {}]  }
   0x1   :  { %14 = vsyncpa [#allocation5], 0  ;;  %s1512_s27 = smov [#allocation2]   ;;  %s1464_s9 = scalar_lea.hbm %s1652_s6, 8192 }
   0x2   :  { %s32_s28 = sshll.u32 %s1512_s27, 4  ;;  %p1465_p0 = scmp.ne.s32.totalorder %s1652_s6, %s1464_s9  ;;  %s33_s28 = int_to_ptr.vmem [resolvable:$true] %s32_s28 }
   0x3   :  { %p1468_p1 = scmp.lt.u32.totalorder %s1464_s9, %s1652_s6 }
   0x5   :  { %p1470_p2 = pnand %p1468_p1, %p1465_p0 }
   0x7   :  { %1473 = shalt.err (!%p1470_p2)
}
   0x8   :  { %s1474_s14 = scalar_lea.vmem %s33_s28, 8192  ;;  %p1479_p4 = scmp.lt.s32.totalorder %s33_s28, %s33_s28 }
   0x9   :  { %p1475_p3 = scmp.ne.s32.totalorder %s33_s28, %s1474_s14  ;;  %p1480_p5 = scmp.lt.s32.totalorder %s1474_s14, %s1474_s14 }
   0xb   :  { %p1481_p6 = por %p1480_p5, %p1479_p4 }
   0xd   :  { %p1482_p7 = pnand %p1481_p6, %p1475_p3 }
   0xf   :  { %1485 = shalt.err (!%p1482_p7)
}
  0x10   :  { %s1513_s15 = smov 128   ;;  %s1514_s16 = smov 8  }
  0x11   :  { %38 = dma.hbm_to_vmem [thread:$0]  %s1652_s6, 8192, %s33_s28, [#allocation3], %s1513_s15, %s1513_s15, %s1514_s16  }
  0x12   :  { %s1515_s19 = smov [#allocation4]   ;;  %s1486_s23 = scalar_lea.hbm %s1653_s7, 4096 }
  0x13   :  { %s44_s20 = sshll.u32 %s1515_s19, 4  ;;  %p1487_p8 = scmp.ne.s32.totalorder %s1653_s7, %s1486_s23  ;;  %s45_s20 = int_to_ptr.vmem [resolvable:$true] %s44_s20 }
  0x14   :  { %p1490_p9 = scmp.lt.u32.totalorder %s1486_s23, %s1653_s7 }
  0x16   :  { %p1492_p10 = pnand %p1490_p9, %p1487_p8 }
  0x18   :  { %1495 = shalt.err (!%p1492_p10)
}
  0x19   :  { %s1496_s29 = scalar_lea.vmem %s45_s20, 4096  ;;  %p1501_p12 = scmp.lt.s32.totalorder %s45_s20, %s45_s20 }
  0x1a   :  { %p1497_p11 = scmp.ne.s32.totalorder %s45_s20, %s1496_s29  ;;  %p1502_p13 = scmp.lt.s32.totalorder %s1496_s29, %s1496_s29 }
  0x1c   :  { %p1503_p0 = por %p1502_p13, %p1501_p12 }
  0x1e   :  { %p1504_p1 = pnand %p1503_p0, %p1497_p11 }
  0x20   :  { %1507 = shalt.err (!%p1504_p1)
}
  0x21   :  { %s1516_s6 = smov 64   ;;  %s1517_s28 = smov 4  }
  0x22   :  { %50 = dma.hbm_to_vmem [thread:$0]  %s1653_s7, 4096, %s45_s20, [#allocation5], %s1516_s6, %s1516_s6, %s1517_s28  }
  0x23   :  { %1508 = dma.done.wait [#allocation3], 8192  }
  0x24   :  { %1509 = vsyncadd [#allocation3], 4294959104 }
  0x25   :  { %1510 = dma.done.wait [#allocation5], 4096  }
  0x26   :  { %1511 = vsyncadd [#allocation5], 4294963200  ;;  %v65_v0 = vlaneseq  ;;  %v1518_v1 = vmov 0   ;;  %v1519_v2 = vmov 1983009808   ;;  %v196_v11 = vld [vmem:[%s1649_s3] sm:$0xff] }
  0x27   :  { %141 = vmatprep.mubr.bf16.mxu0 %v1518_v1  ;;  %182 = vmatprep.mubr.bf16.mxu1 %v1518_v1  ;;  %v222_v3 = vunpack.c.l.s4 %v1519_v2  ;;  %v1329_v6 = vld [vmem:[%s1648_s2 + $0x4] ss:$16 sps:$4 sm:$0xff]   ;;  %v1331_v8 = vld [vmem:[%s1648_s2 + $0xc] ss:$16 sps:$4 sm:$0xff]   ;;  %v1333_v9 = vld [vmem:[%s1648_s2] ss:$16 sps:$4 sm:$0xff]   ;;  %v220_v14 = vcombine.high %v196_v11, %v196_v11 }
  0x28   :  { %v1589_v4 = vshrl.u32 %v65_v0, 7  ;;  %109 = vmatprep.subr.bf16.mxu0 %v1329_v6  ;;  %v1334_v10 = vld [vmem:[%s1648_s2 + $0x8] ss:$16 sps:$4 sm:$0xff]   ;;  %150 = vmatprep.subr.bf16.mxu1 %v1331_v8  ;;  %vm241_vm0 = vcmask 1041408   ;;  %v58_v12 = vld [vmem:[%s1646_s0] sm:$0xf] }
  0x29   :  { %v223_v5 = vunpack.c.0.s8 %v222_v3  ;;  %110 = vmatpush1.bf16.msra.mxu0 %v1333_v9  ;;  %151 = vmatpush1.bf16.msra.mxu1 %v1334_v10  ;;  %vm105_vm1 = vcmask 130048   ;;  %v1338_v18 = vld [vmem:[#allocation2 + $0x4] ss:$8 sps:$4 sm:$0xff]   ;;  %v1336_v22 = vld [vmem:[#allocation2] ss:$8 sps:$4 sm:$0xff]   ;;  %vm237_vm2 = vcmask 31744  }
  0x2a   :  { %v1341_v21 = vld [vmem:[#allocation2 + $0x104] ss:$8 sps:$4 sm:$0xff]   ;;  %v1339_v23 = vld [vmem:[#allocation2 + $0x100] ss:$8 sps:$4 sm:$0xff]   ;;  %v1344_v25 = vld [vmem:[#allocation2 + $0x14] ss:$8 sps:$4 sm:$0xff]  }
  0x2b   :  { %v226_v7 = vsub.s32 %v223_v5, %v1589_v4  ;;  %v195_v24 = vld [vmem:[%s1647_s1] sm:$0xf]  ;;  %v1347_v26 = vld [vmem:[#allocation2 + $0x114] ss:$8 sps:$4 sm:$0xff]   ;;  %v1342_v27 = vld [vmem:[#allocation2 + $0x10] ss:$8 sps:$4 sm:$0xff]  }
  0x2c   :  { %1163 = vmatmul.mubr.msk.bf16.vlgmr.msra.gmra.mrb[0].mxu0 %vm105_vm1, %v58_v12  ;;  %1164 = vmatmul.mubr.msk.bf16.vlgmr.msra.gmra.mrb[0].mxu1 %vm105_vm1, %v58_v12  ;;  %v1345_v28 = vld [vmem:[#allocation2 + $0x110] ss:$8 sps:$4 sm:$0xff]   ;;  %v1350_v29 = vld [vmem:[#allocation2 + $0x24] ss:$8 sps:$4 sm:$0xff]   ;;  %v1348_v31 = vld [vmem:[#allocation2 + $0x20] ss:$8 sps:$4 sm:$0xff]  }
  0x2d   :  { %v227_v13 = vrot.slane %v196_v11, %v226_v7  ;;  %v234_v16 = vrot.slane %v220_v14, %v226_v7  ;;  %286 = vmatprep.mubr.bf16.mxu0 %v1518_v1  ;;  %327 = vmatprep.mubr.bf16.mxu1 %v1518_v1  ;;  %v1353_v30 = vld [vmem:[#allocation2 + $0x124] ss:$8 sps:$4 sm:$0xff]   ;;  %v1351_v32 = vld [vmem:[#allocation2 + $0x120] ss:$8 sps:$4 sm:$0xff]   ;;  %v1356_v33 = vld [vmem:[#allocation2 + $0x34] ss:$8 sps:$4 sm:$0xff]  }
  0x2e   :  { %v1359_v34 = vld [vmem:[#allocation2 + $0x134] ss:$8 sps:$4 sm:$0xff]   ;;  %v1354_v35 = vld [vmem:[#allocation2 + $0x30] ss:$8 sps:$4 sm:$0xff]   ;;  %v1362_v37 = vld [vmem:[#allocation2 + $0x44] ss:$8 sps:$4 sm:$0xff]  }
  0x2f   :  { %v235_v15 = vcombine.high %v227_v13, %v227_v13  ;;  %v243_v17 = vsel %vm241_vm0, %v227_v13, 0  ;;  %v236_v19 = vcombine.high %v234_v16, %v234_v16  ;;  %v249_v20 = vsel %vm241_vm0, %v234_v16, 0  ;;  %v1357_v36 = vld [vmem:[#allocation2 + $0x130] ss:$8 sps:$4 sm:$0xff]   ;;  %v1365_v38 = vld [vmem:[#allocation2 + $0x144] ss:$8 sps:$4 sm:$0xff]  }
  0x30   :  { %v1360_v39 = vld [vmem:[#allocation2 + $0x40] ss:$8 sps:$4 sm:$0xff]   ;;  %v1368_v41 = vld [vmem:[#allocation2 + $0x54] ss:$8 sps:$4 sm:$0xff]   ;;  %v1366_v43 = vld [vmem:[#allocation2 + $0x50] ss:$8 sps:$4 sm:$0xff]  }
  0x31   :  { %1165 = vmatprep.subr.msk.bf16.mxu0 %vm241_vm0, %v235_v15  ;;  %1167 = vmatprep.subr.msk.bf16.mxu1 %vm241_vm0, %v236_v19  ;;  %v1363_v40 = vld [vmem:[#allocation2 + $0x140] ss:$8 sps:$4 sm:$0xff]   ;;  %v1371_v42 = vld [vmem:[#allocation2 + $0x154] ss:$8 sps:$4 sm:$0xff]   ;;  %v1369_v44 = vld [vmem:[#allocation2 + $0x150] ss:$8 sps:$4 sm:$0xff]  }
  0x32   :  { %255 = vmatpush1.bf16.msra.mxu0 %v243_v17  ;;  %296 = vmatpush1.bf16.msra.mxu1 %v249_v20  ;;  %v1374_v45 = vld [vmem:[#allocation2 + $0x64] ss:$8 sps:$4 sm:$0xff]   ;;  %v1372_v47 = vld [vmem:[#allocation2 + $0x60] ss:$8 sps:$4 sm:$0xff]   ;;  %v1380_v49 = vld [vmem:[#allocation2 + $0x74] ss:$8 sps:$4 sm:$0xff]  }
  0x33   :  { %532 = vmatprep.subr.bf16.mxu0 %v1338_v18  ;;  %768 = vmatprep.subr.bf16.mxu1 %v1341_v21  ;;  %v1377_v46 = vld [vmem:[#allocation2 + $0x164] ss:$8 sps:$4 sm:$0xff]   ;;  %v1375_v48 = vld [vmem:[#allocation2 + $0x160] ss:$8 sps:$4 sm:$0xff]   ;;  %v1383_v50 = vld [vmem:[#allocation2 + $0x174] ss:$8 sps:$4 sm:$0xff]  }
  0x34   :  { %v1378_v51 = vld [vmem:[#allocation2 + $0x70] ss:$8 sps:$4 sm:$0xff]   ;;  %v1386_v53 = vld [vmem:[#allocation2 + $0x84] ss:$8 sps:$4 sm:$0xff]   ;;  %v1384_v55 = vld [vmem:[#allocation2 + $0x80] ss:$8 sps:$4 sm:$0xff]  }
  0x35   :  { %1166 = vmatmul.mubr.msk.bf16.vlgmr.msra.gmra.mrb[4].mxu0 %vm237_vm2, %v195_v24  ;;  %1168 = vmatmul.mubr.msk.bf16.vlgmr.msra.gmra.mrb[4].mxu1 %vm237_vm2, %v195_v24  ;;  %v1381_v52 = vld [vmem:[#allocation2 + $0x170] ss:$8 sps:$4 sm:$0xff]   ;;  %v1389_v54 = vld [vmem:[#allocation2 + $0x184] ss:$8 sps:$4 sm:$0xff]   ;;  %v1387_v56 = vld [vmem:[#allocation2 + $0x180] ss:$8 sps:$4 sm:$0xff]  }
  0x36   :  { %533 = vmatpush1.bf16.msra.mxu0 %v1336_v22  ;;  %769 = vmatpush1.bf16.msra.mxu1 %v1339_v23  ;;  %v1392_v57 = vld [vmem:[#allocation2 + $0x94] ss:$8 sps:$4 sm:$0xff]   ;;  %v1390_v59 = vld [vmem:[#allocation2 + $0x90] ss:$8 sps:$4 sm:$0xff]   ;;  %v1398_v61 = vld [vmem:[#allocation2 + $0xa4] ss:$8 sps:$4 sm:$0xff]  }
  0x37   :  { %534 = vmatprep.subr.bf16.mxu0 %v1344_v25  ;;  %770 = vmatprep.subr.bf16.mxu1 %v1347_v26  ;;  %v1395_v58 = vld [vmem:[#allocation2 + $0x194] ss:$8 sps:$4 sm:$0xff]   ;;  %v1393_v60 = vld [vmem:[#allocation2 + $0x190] ss:$8 sps:$4 sm:$0xff]   ;;  %v1401_v62 = vld [vmem:[#allocation2 + $0x1a4] ss:$8 sps:$4 sm:$0xff]  }
  0x38   :  { %v1396_v63 = vld [vmem:[#allocation2 + $0xa0] ss:$8 sps:$4 sm:$0xff]   ;;  %v1404_v1 = vld [vmem:[#allocation2 + $0xb4] ss:$8 sps:$4 sm:$0xff]   ;;  %v1402_v3 = vld [vmem:[#allocation2 + $0xb0] ss:$8 sps:$4 sm:$0xff]  }
  0x39   :  { %v1399_v0 = vld [vmem:[#allocation2 + $0x1a0] ss:$8 sps:$4 sm:$0xff]   ;;  %v1407_v2 = vld [vmem:[#allocation2 + $0x1b4] ss:$8 sps:$4 sm:$0xff]   ;;  %v1405_v5 = vld [vmem:[#allocation2 + $0x1b0] ss:$8 sps:$4 sm:$0xff]  }
  0x3a   :  { %535 = vmatpush1.bf16.msra.mxu0 %v1342_v27  ;;  %771 = vmatpush1.bf16.msra.mxu1 %v1345_v28  ;;  %v1410_v6 = vld [vmem:[#allocation2 + $0xc4] ss:$8 sps:$4 sm:$0xff]   ;;  %v1408_v8 = vld [vmem:[#allocation2 + $0xc0] ss:$8 sps:$4 sm:$0xff]   ;;  %v1416_v10 = vld [vmem:[#allocation2 + $0xd4] ss:$8 sps:$4 sm:$0xff]  }
  0x3b   :  { %536 = vmatprep.subr.bf16.mxu0 %v1350_v29  ;;  %772 = vmatprep.subr.bf16.mxu1 %v1353_v30  ;;  %v1413_v7 = vld [vmem:[#allocation2 + $0x1c4] ss:$8 sps:$4 sm:$0xff]   ;;  %v1411_v9 = vld [vmem:[#allocation2 + $0x1c0] ss:$8 sps:$4 sm:$0xff]   ;;  %v1419_v11 = vld [vmem:[#allocation2 + $0x1d4] ss:$8 sps:$4 sm:$0xff]  }
  0x3c   :  { %v1414_v12 = vld [vmem:[#allocation2 + $0xd0] ss:$8 sps:$4 sm:$0xff]   ;;  %v1422_v14 = vld [vmem:[#allocation2 + $0xe4] ss:$8 sps:$4 sm:$0xff]   ;;  %v1420_v16 = vld [vmem:[#allocation2 + $0xe0] ss:$8 sps:$4 sm:$0xff]  }
  0x3d   :  { %v1417_v13 = vld [vmem:[#allocation2 + $0x1d0] ss:$8 sps:$4 sm:$0xff]   ;;  %v1425_v15 = vld [vmem:[#allocation2 + $0x1e4] ss:$8 sps:$4 sm:$0xff]   ;;  %v1423_v17 = vld [vmem:[#allocation2 + $0x1e0] ss:$8 sps:$4 sm:$0xff]  }
  0x3e   :  { %537 = vmatpush1.bf16.msra.mxu0 %v1348_v31  ;;  %773 = vmatpush1.bf16.msra.mxu1 %v1351_v32  ;;  %v1428_v18 = vld [vmem:[#allocation2 + $0xf4] ss:$8 sps:$4 sm:$0xff]   ;;  %v1426_v20 = vld [vmem:[#allocation2 + $0xf0] ss:$8 sps:$4 sm:$0xff]   ;;  %v1432_v22 = vld [vmem:[#allocation4 + $0xc0] sm:$0xff]   ;;  %v67_v24 = vsub.s32 0, %v1589_v4 }
  0x3f   :  { %538 = vmatprep.subr.bf16.mxu0 %v1356_v33  ;;  %774 = vmatprep.subr.bf16.mxu1 %v1359_v34  ;;  %v1431_v19 = vld [vmem:[#allocation2 + $0x1f4] ss:$8 sps:$4 sm:$0xff]   ;;  %v1429_v21 = vld [vmem:[#allocation2 + $0x1f0] ss:$8 sps:$4 sm:$0xff]   ;;  %v1433_v23 = vld [vmem:[#allocation4 + $0x40] sm:$0xff]   ;;  %v75_v25 = vsub.s32 2, %v1589_v4 }
  0x40   :  { %v63_v26 = vld [vmem:[%s1650_s4] sm:$0xf]  ;;  %v71_v27 = vsub.s32 1, %v1589_v4  ;;  %v79_v28 = vsub.s32 3, %v1589_v4 }
  0x41   :  { %v68_v29 = vrot.slane %v63_v26, %v67_v24  ;;  %v76_v30 = vrot.slane %v63_v26, %v75_v25 }
  0x42   :  { %539 = vmatpush1.bf16.msra.mxu0 %v1354_v35  ;;  %775 = vmatpush1.bf16.msra.mxu1 %v1357_v36  ;;  %v72_v31 = vrot.slane %v63_v26, %v71_v27  ;;  %v80_v32 = vrot.slane %v63_v26, %v79_v28 }
  0x43   :  { %540 = vmatprep.subr.bf16.mxu0 %v1362_v37  ;;  %776 = vmatprep.subr.bf16.mxu1 %v1365_v38 }
  0x46   :  { %541 = vmatpush1.bf16.msra.mxu0 %v1360_v39  ;;  %777 = vmatpush1.bf16.msra.mxu1 %v1363_v40 }
  0x47   :  { %542 = vmatprep.subr.bf16.mxu0 %v1368_v41  ;;  %778 = vmatprep.subr.bf16.mxu1 %v1371_v42 }
  0x4a   :  { %543 = vmatpush1.bf16.msra.mxu0 %v1366_v43  ;;  %779 = vmatpush1.bf16.msra.mxu1 %v1369_v44 }
  0x4b   :  { %544 = vmatprep.subr.bf16.mxu0 %v1374_v45  ;;  %780 = vmatprep.subr.bf16.mxu1 %v1377_v46 }
  0x4e   :  { %545 = vmatpush1.bf16.msra.mxu0 %v1372_v47  ;;  %781 = vmatpush1.bf16.msra.mxu1 %v1375_v48 }
  0x4f   :  { %546 = vmatprep.subr.bf16.mxu0 %v1380_v49  ;;  %782 = vmatprep.subr.bf16.mxu1 %v1383_v50 }
  0x52   :  { %547 = vmatpush1.bf16.msra.mxu0 %v1378_v51  ;;  %783 = vmatpush1.bf16.msra.mxu1 %v1381_v52  ;;  %v1434_v51 = vld [vmem:[#allocation4 + $0x80] sm:$0xff]  }
  0x53   :  { %548 = vmatprep.subr.bf16.mxu0 %v1386_v53  ;;  %784 = vmatprep.subr.bf16.mxu1 %v1389_v54  ;;  %v1435_v52 = vld [vmem:[#allocation4] sm:$0xff]  }
  0x56   :  { %549 = vmatpush1.bf16.msra.mxu0 %v1384_v55  ;;  %785 = vmatpush1.bf16.msra.mxu1 %v1387_v56  ;;  %v1436_v55 = vld [vmem:[#allocation4 + $0xc8] sm:$0xff]  }
  0x57   :  { %550 = vmatprep.subr.bf16.mxu0 %v1392_v57  ;;  %786 = vmatprep.subr.bf16.mxu1 %v1395_v58  ;;  %v1437_v56 = vld [vmem:[#allocation4 + $0x48] sm:$0xff]  }
  0x58   :  { %v1438_v57 = vld [vmem:[#allocation4 + $0x88] sm:$0xff]  }
  0x59   :  { %v1439_v58 = vld [vmem:[#allocation4 + $0x8] sm:$0xff]  }
  0x5a   :  { %551 = vmatpush1.bf16.msra.mxu0 %v1390_v59  ;;  %787 = vmatpush1.bf16.msra.mxu1 %v1393_v60  ;;  %v1440_v59 = vld [vmem:[#allocation4 + $0xd0] sm:$0xff]  }
  0x5b   :  { %552 = vmatprep.subr.bf16.mxu0 %v1398_v61  ;;  %788 = vmatprep.subr.bf16.mxu1 %v1401_v62  ;;  %v1441_v60 = vld [vmem:[#allocation4 + $0x50] sm:$0xff]  }
  0x5c   :  { %v1442_v61 = vld [vmem:[#allocation4 + $0x90] sm:$0xff]  }
  0x5d   :  { %v1443_v62 = vld [vmem:[#allocation4 + $0x10] sm:$0xff]  }
  0x5e   :  { %553 = vmatpush1.bf16.msra.mxu0 %v1396_v63  ;;  %789 = vmatpush1.bf16.msra.mxu1 %v1399_v0  ;;  %v1444_v63 = vld [vmem:[#allocation4 + $0xd8] sm:$0xff]  }
  0x5f   :  { %554 = vmatprep.subr.bf16.mxu0 %v1404_v1  ;;  %790 = vmatprep.subr.bf16.mxu1 %v1407_v2  ;;  %v1445_v0 = vld [vmem:[#allocation4 + $0x58] sm:$0xff]  }
  0x60   :  { %v1446_v1 = vld [vmem:[#allocation4 + $0x98] sm:$0xff]  }
  0x61   :  { %v1447_v2 = vld [vmem:[#allocation4 + $0x18] sm:$0xff]  }
  0x62   :  { %555 = vmatpush1.bf16.msra.mxu0 %v1402_v3  ;;  %791 = vmatpush1.bf16.msra.mxu1 %v1405_v5  ;;  %v1448_v3 = vld [vmem:[#allocation4 + $0xe0] sm:$0xff]  }
  0x63   :  { %556 = vmatprep.subr.bf16.mxu0 %v1410_v6  ;;  %792 = vmatprep.subr.bf16.mxu1 %v1413_v7  ;;  %v1449_v5 = vld [vmem:[#allocation4 + $0x60] sm:$0xff]  }
  0x64   :  { %v1450_v6 = vld [vmem:[#allocation4 + $0xa0] sm:$0xff]  }
  0x65   :  { %v1451_v7 = vld [vmem:[#allocation4 + $0x20] sm:$0xff]  }
  0x66   :  { %557 = vmatpush1.bf16.msra.mxu0 %v1408_v8  ;;  %793 = vmatpush1.bf16.msra.mxu1 %v1411_v9  ;;  %v1452_v8 = vld [vmem:[#allocation4 + $0xe8] sm:$0xff]  }
  0x67   :  { %558 = vmatprep.subr.bf16.mxu0 %v1416_v10  ;;  %794 = vmatprep.subr.bf16.mxu1 %v1419_v11  ;;  %v1453_v9 = vld [vmem:[#allocation4 + $0x68] sm:$0xff]  }
  0x68   :  { %v1454_v10 = vld [vmem:[#allocation4 + $0xa8] sm:$0xff]  }
  0x69   :  { %v1455_v11 = vld [vmem:[#allocation4 + $0x28] sm:$0xff]  }
  0x6a   :  { %559 = vmatpush1.bf16.msra.mxu0 %v1414_v12  ;;  %795 = vmatpush1.bf16.msra.mxu1 %v1417_v13  ;;  %v1456_v12 = vld [vmem:[#allocation4 + $0xf0] sm:$0xff]  }
  0x6b   :  { %560 = vmatprep.subr.bf16.mxu0 %v1422_v14  ;;  %796 = vmatprep.subr.bf16.mxu1 %v1425_v15  ;;  %v1457_v13 = vld [vmem:[#allocation4 + $0x70] sm:$0xff]  }
  0x6c   :  { %v1458_v14 = vld [vmem:[#allocation4 + $0xb0] sm:$0xff]  }
  0x6d   :  { %v1459_v15 = vld [vmem:[#allocation4 + $0x30] sm:$0xff]  }
  0x6e   :  { %561 = vmatpush1.bf16.msra.mxu0 %v1420_v16  ;;  %797 = vmatpush1.bf16.msra.mxu1 %v1423_v17  ;;  %v1460_v16 = vld [vmem:[#allocation4 + $0xf8] sm:$0xff]  }
  0x6f   :  { %562 = vmatprep.subr.bf16.mxu0 %v1428_v18  ;;  %798 = vmatprep.subr.bf16.mxu1 %v1431_v19  ;;  %v1461_v17 = vld [vmem:[#allocation4 + $0x78] sm:$0xff]  }
  0x70   :  { %v1462_v18 = vld [vmem:[#allocation4 + $0xb8] sm:$0xff]  }
  0x71   :  { %v1463_v19 = vld [vmem:[#allocation4 + $0x38] sm:$0xff]  }
  0x72   :  { %563 = vmatpush1.bf16.msra.mxu0 %v1426_v20  ;;  %799 = vmatpush1.bf16.msra.mxu1 %v1429_v21  ;;  %v197_v20 = vld [vmem:[%s1651_s5] sm:$0xf] }
  0x73   :  { %1265 = vmatprep.subr.bf16.mxu0 %v1432_v22  ;;  %1287 = vmatprep.subr.bf16.mxu1 %v1433_v23  ;;  %v202_v21 = vrot.slane %v197_v20, %v67_v24  ;;  %v210_v22 = vrot.slane %v197_v20, %v75_v25  ;;  %v206_v23 = vrot.slane %v197_v20, %v71_v27 }
  0x74   :  { %v214_v26 = vrot.slane %v197_v20, %v79_v28 }
  0xff   :  { %v143_v33 = vpop.f32.mrb[0].mxu0  ;;  %v184_v34 = vpop.f32.mrb[0].mxu1 }
 0x100   :  { %v144_v35 = vadd.f32 %v143_v33, %v68_v29  ;;  %v185_v36 = vadd.f32 %v184_v34, %v76_v30  ;;  %v145_v37 = vpop.f32.mrb[1].mxu0  ;;  %v186_v38 = vpop.f32.mrb[1].mxu1 }
 0x101   :  { %v146_v39 = vadd.f32 %v145_v37, %v72_v31  ;;  %v187_v40 = vadd.f32 %v186_v38, %v80_v32  ;;  %v147_v41 = vpop.f32.mrb[2].mxu0  ;;  %v188_v42 = vpop.f32.mrb[2].mxu1 }
 0x102   :  { %v191_v43 = vmax.f32 %v144_v35, 0.0  ;;  %v193_v44 = vmax.f32 %v185_v36, 0.0  ;;  %v148_v45 = vpop.f32.mrb[3].mxu0  ;;  %v189_v46 = vpop.f32.mrb[3].mxu1 }
 0x103   :  { %v192_v47 = vmax.f32 %v146_v39, 0.0  ;;  %v194_v48 = vmax.f32 %v187_v40, 0.0 }
 0x104   :  { %v336_v53 = vpack.c.bf16 %v191_v43, %v191_v43  ;;  %v338_v54 = vpack.c.bf16 %v193_v44, %v193_v44 }
 0x105   :  { %v337_v49 = vpack.c.bf16 %v192_v47, %v192_v47  ;;  %v339_v50 = vpack.c.bf16 %v194_v48, %v194_v48 }
 0x107   :  { %564 = vmatprep.mubr.bf16.mxu0 %v337_v49  ;;  %800 = vmatprep.mubr.bf16.mxu1 %v339_v50 }
 0x108   :  { %565 = vmatmul.mubr.bf16.vlgmr.msra.gmra.mrb[4].mxu0 %v336_v53  ;;  %801 = vmatmul.mubr.bf16.vlgmr.msra.gmra.mrb[4].mxu1 %v338_v54 }
 0x109   :  { %1266 = vmatpush3.bf16.msra.mxu0 %v1434_v51  ;;  %1288 = vmatpush3.bf16.msra.mxu1 %v1435_v52 }
 0x10a   :  { %1267 = vmatprep.subr.bf16.mxu0 %v1436_v55  ;;  %1289 = vmatprep.subr.bf16.mxu1 %v1437_v56 }
 0x10d   :  { %1268 = vmatpush3.bf16.msra.mxu0 %v1438_v57  ;;  %1290 = vmatpush3.bf16.msra.mxu1 %v1439_v58 }
 0x10e   :  { %1269 = vmatprep.subr.bf16.mxu0 %v1440_v59  ;;  %1291 = vmatprep.subr.bf16.mxu1 %v1441_v60 }
 0x111   :  { %1270 = vmatpush3.bf16.msra.mxu0 %v1442_v61  ;;  %1292 = vmatpush3.bf16.msra.mxu1 %v1443_v62 }
 0x112   :  { %1271 = vmatprep.subr.bf16.mxu0 %v1444_v63  ;;  %1293 = vmatprep.subr.bf16.mxu1 %v1445_v0 }
 0x115   :  { %1272 = vmatpush3.bf16.msra.mxu0 %v1446_v1  ;;  %1294 = vmatpush3.bf16.msra.mxu1 %v1447_v2 }
 0x116   :  { %1273 = vmatprep.subr.bf16.mxu0 %v1448_v3  ;;  %1295 = vmatprep.subr.bf16.mxu1 %v1449_v5 }
 0x119   :  { %1274 = vmatpush3.bf16.msra.mxu0 %v1450_v6  ;;  %1296 = vmatpush3.bf16.msra.mxu1 %v1451_v7 }
 0x11a   :  { %1275 = vmatprep.subr.bf16.mxu0 %v1452_v8  ;;  %1297 = vmatprep.subr.bf16.mxu1 %v1453_v9 }
 0x11d   :  { %1276 = vmatpush3.bf16.msra.mxu0 %v1454_v10  ;;  %1298 = vmatpush3.bf16.msra.mxu1 %v1455_v11 }
 0x11e   :  { %1277 = vmatprep.subr.bf16.mxu0 %v1456_v12  ;;  %1299 = vmatprep.subr.bf16.mxu1 %v1457_v13 }
 0x121   :  { %1278 = vmatpush3.bf16.msra.mxu0 %v1458_v14  ;;  %1300 = vmatpush3.bf16.msra.mxu1 %v1459_v15 }
 0x122   :  { %1279 = vmatprep.subr.bf16.mxu0 %v1460_v16  ;;  %1301 = vmatprep.subr.bf16.mxu1 %v1461_v17 }
 0x125   :  { %1280 = vmatpush3.bf16.msra.mxu0 %v1462_v18  ;;  %1302 = vmatpush3.bf16.msra.mxu1 %v1463_v19 }
 0x1db   :  { %v566_v29 = vpop.f32.mrb[4].mxu0  ;;  %v802_v30 = vpop.f32.mrb[4].mxu1 }
 0x1dc   :  { %v1309_v31 = vadd.f32 %v566_v29, %v202_v21  ;;  %v1311_v32 = vadd.f32 %v802_v30, %v210_v22  ;;  %v568_v33 = vpop.f32.mrb[5].mxu0  ;;  %v804_v34 = vpop.f32.mrb[5].mxu1 }
 0x1dd   :  { %v1310_v35 = vadd.f32 %v568_v33, %v206_v23  ;;  %v1312_v36 = vadd.f32 %v804_v34, %v214_v26  ;;  %v570_v37 = vpop.f32.mrb[6].mxu0  ;;  %v806_v38 = vpop.f32.mrb[6].mxu1 }
 0x1de   :  { %v573_v24 = vmax.f32 %v1309_v31, 0.0  ;;  %v809_v39 = vmax.f32 %v1311_v32, 0.0  ;;  %v571_v40 = vpop.f32.mrb[7].mxu0  ;;  %v807_v25 = vpop.f32.mrb[7].mxu1 }
 0x1df   :  { %v574_v41 = vmax.f32 %v1310_v35, 0.0  ;;  %v810_v42 = vmax.f32 %v1312_v36, 0.0 }
 0x1e0   :  { %v811_v4 = vpack.c.bf16 %v573_v24, %v573_v24  ;;  %v845_v28 = vpack.c.bf16 %v809_v39, %v809_v39 }
 0x1e1   :  { %v812_v27 = vpack.c.bf16 %v574_v41, %v574_v41  ;;  %v846_v43 = vpack.c.bf16 %v810_v42, %v810_v42 }
 0x1e3   :  { %1008 = vmatprep.mubr.bf16.mxu0 %v846_v43  ;;  %1144 = vmatprep.mubr.bf16.mxu1 %v812_v27 }
 0x1e4   :  { %1009 = vmatmul.mubr.bf16.vlgmr.msra.gmra.mrb[8].mxu0 %v845_v28  ;;  %1145 = vmatmul.mubr.bf16.vlgmr.msra.gmra.mrb[8].mxu1 %v811_v4 }
 0x2b7   :  { %v1281_v44 = vpop.f32.mrb[8].mxu0  ;;  %v1303_v45 = vpop.f32.mrb[8].mxu1 }
 0x2b8   :  { %v1282_v46 = vpop.f32.mrb[9].mxu0  ;;  %v1304_v47 = vpop.f32.mrb[9].mxu1 }
 0x2b9   :  { %v1283_v48 = vadd.f32 %v1282_v46, %v1281_v44  ;;  %v1305_v49 = vadd.f32 %v1304_v47, %v1303_v45  ;;  %v1284_v50 = vpop.f32.mrb[10].mxu0  ;;  %v1306_v51 = vpop.f32.mrb[10].mxu1 }
 0x2ba   :  { %v1285_v52 = vpop.f32.mrb[11].mxu0  ;;  %v1307_v53 = vpop.f32.mrb[11].mxu1 }
 0x2bb   :  { %v1147_v54 = vadd.f32 %v1305_v49, %v1283_v48 }
 0x2bd   :  { %1152 = vst [vmem:[%s1654_s8] sm:$0xff] %v1147_v54 }
 0x2be   :  { %1157 = vsyncpa [#allocation3], 1 }
 0x2bf   :  { %1158 = vsyncpa [#allocation5], 1 }

</bundles_post_ra>
